<compile_context>
chip_gen: v6e
topology: v6e:2x2x1
jax: 0.10.0
libtpu: 0.0.40
codegen_flags: <defaults>
</compile_context>

<pallas_src>
import math
import jax
import jax.numpy as jnp
from jax.experimental import pallas as pl
from jax.experimental.pallas import tpu as pltpu


def _gelu_tanh(x):
    # GELU with tanh approximation, matching torch.nn.GELU(approximate='tanh')
    c = math.sqrt(2.0 / math.pi)
    return 0.5 * x * (1.0 + jnp.tanh(c * (x + 0.044715 * x * x * x)))


# --------------------------------------------------------------------------
# Kernels
# --------------------------------------------------------------------------
def _mlp_kernel_resident(x_ref, w1_ref, b1_ref, w2_ref, b2_ref, o_ref):
    # Whole hidden dim in one pass; W1/W2 are VMEM-resident (Buffered(1),
    # constant index map -> DMA'd once for the whole kernel).
    h = jnp.dot(x_ref[...], w1_ref[...], preferred_element_type=jnp.float32)
    h = _gelu_tanh(h + b1_ref[...].astype(jnp.float32))
    out = jnp.dot(h.astype(w2_ref.dtype), w2_ref[...],
                  preferred_element_type=jnp.float32)
    o_ref[...] = (out + b2_ref[...].astype(jnp.float32)).astype(o_ref.dtype)


def _mlp_kernel_tiled(x_ref, w1_ref, b1_ref, w2_ref, b2_ref, o_ref, acc_ref):
    # grid = (M // tm, H // th); axis 1 is the hidden-dim slab (reduction for
    # the second matmul). acc_ref is a (tm, C) f32 accumulator resident
    # across the k axis.
    k = pl.program_id(1)

    @pl.when(k == 0)
    def _init():
        # Fold the c_proj bias into the accumulator once per row tile.
        acc_ref[...] = jnp.broadcast_to(
            b2_ref[...].astype(jnp.float32), acc_ref.shape)

    h = jnp.dot(x_ref[...], w1_ref[...], preferred_element_type=jnp.float32)
    h = _gelu_tanh(h + b1_ref[...].astype(jnp.float32))
    acc_ref[...] += jnp.dot(h.astype(w2_ref.dtype), w2_ref[...],
                            preferred_element_type=jnp.float32)

    @pl.when(k == pl.num_programs(1) - 1)
    def _finalize():
        o_ref[...] = acc_ref[...].astype(o_ref.dtype)


# --------------------------------------------------------------------------
# Planning helpers
# --------------------------------------------------------------------------
_HEADROOM = 6 << 20  # Mosaic internal scratch / misc


def _round_up(x, m):
    return ((x + m - 1) // m) * m


def _pick_th(H, want):
    """Largest 128-multiple divisor of H that is <= max(want, 128); else H."""
    if H % 128 != 0:
        # TODO(synk): hidden dims that are not 128-multiples fall back to a
        # full-H slab (lane-alignment constraint); fine for GPT-2 sizes.
        return H
    t = min(max(want, 128), H)
    t = (t // 128) * 128
    while t >= 128:
        if H % t == 0:
            return t
        t -= 128
    return H


def _pick_tm(M, want):
    """Row tile: 256-aligned for large M; keep >=2 tiles so megacore shards."""
    Mr = _round_up(max(M, 1), 16)
    if Mr <= 256:
        return Mr, Mr                               # single small tile
    want = max(256, (min(want, Mr) // 256) * 256)
    half = _round_up((Mr + 1) // 2, 256)            # ensure >= 2 row tiles
    tm = max(256, min(want, half))
    return tm, _round_up(Mr, tm)


def _vmem_budget():
    cap = None
    try:
        cap = getattr(pltpu.get_tpu_info(), "vmem_capacity_bytes", None)
    except Exception:
        cap = None
    if not cap:
        cap = 64 << 20                              # conservative (v7x)
    # 64 MiB (v7x) -> 48 MiB usable; 128 MiB (v5e/v6e) -> 96 MiB usable.
    return (int(cap) * 3) // 4


def _resident_bytes(tm, C, H, bpe_c, bpe_o):
    return (2 * tm * C * bpe_c            # x tile (double buffered)
            + 2 * tm * C * bpe_o          # out tile (double buffered)
            + C * H * bpe_c               # W1 resident (Buffered(1))
            + H * C * bpe_c               # W2 resident (Buffered(1))
            + H * 4 + C * 4               # biases (f32)
            + tm * H * (4 + bpe_c)        # h intermediate (f32 + bf16 copy)
            + tm * C * 4)                 # f32 result before cast


def _tiled_bytes(tm, th, C, H, bpe_c, bpe_o):
    return (2 * tm * C * bpe_c
            + 2 * tm * C * bpe_o
            + 2 * C * th * bpe_c          # W1 slab (double buffered)
            + 2 * th * C * bpe_c          # W2 slab (double buffered)
            + 2 * th * 4 + C * 4
            + tm * C * 4                  # f32 accumulator scratch
            + tm * th * (4 + bpe_c))      # h intermediate


def _plan(M, C, H, bpe_c, bpe_o, tm_want, th_want, mode):
    budget = _vmem_budget()
    tm, Mp = _pick_tm(M, tm_want)
    for _ in range(8):
        if mode != "tiled":
            res = _resident_bytes(tm, C, H, bpe_c, bpe_o)
            if res + _HEADROOM <= budget:
                return "resident", tm, Mp, None
        if mode != "resident":
            th = _pick_th(H, th_want)
            while True:
                if _tiled_bytes(tm, th, C, H, bpe_c, bpe_o) + _HEADROOM <= budget:
                    return "tiled", tm, Mp, th
                nth = _pick_th(H, th // 2)
                if nth >= th:
                    break
                th = nth
        if tm <= 256:
            break
        tm = max(256, (tm // 2 // 256) * 256)
        Mp = _round_up(M, tm)
    # Last resort: smallest config even if over the soft budget.
    if mode == "resident":
        return "resident", tm, Mp, None
    return "tiled", tm, Mp, _pick_th(H, 128)


# --------------------------------------------------------------------------
# Public API
# --------------------------------------------------------------------------
def prepare_mlp_params(w_fc, b_fc, w_proj, b_proj, compute_dtype=jnp.bfloat16):
    """One-time weight prep (transpose + cast). Call at model init, NOT per
    forward, so no per-call HBM transpose/cast traffic precedes the kernel.

    PyTorch nn.Linear layout: w_fc (4C, C), w_proj (C, 4C)."""
    H, C = w_fc.shape
    w1 = jnp.asarray(w_fc).T.astype(compute_dtype)            # (C, H)
    w2 = jnp.asarray(w_proj).T.astype(compute_dtype)          # (H, C)
    b1 = jnp.asarray(b_fc).reshape(1, H).astype(jnp.float32)
    b2 = jnp.asarray(b_proj).reshape(1, C).astype(jnp.float32)
    return w1, b1, w2, b2


def mlp_forward(x, w1, b1, w2, b2, *, tm=None, th=None, mode=None):
    """y = GELU_tanh(x @ W1 + b1) @ W2 + b2 with pre-prepared W1=(C,H), W2=(H,C).

    x: (B, T, C). Returns (B, T, C) in x.dtype."""
    B, T, C = x.shape
    H = w1.shape[1]
    M = B * T
    out_dtype = x.dtype
    compute_dtype = w1.dtype
    bpe_c = jnp.dtype(compute_dtype).itemsize
    bpe_o = jnp.dtype(out_dtype).itemsize

    plan_mode, ptm, Mp, pth = _plan(M, C, H, bpe_c, bpe_o,
                                    tm_want=(tm or 1024),
                                    th_want=(th or 1024),
                                    mode=mode)
    if tm is not None:
        ptm = max(16, _round_up(tm, 16))
        Mp = _round_up(M, ptm)
    if plan_mode == "tiled" and th is not None:
        pth = th if (H % th == 0 and th % 128 == 0) else _pick_th(H, th)

    if plan_mode == "resident":
        est = _resident_bytes(ptm, C, H, bpe_c, bpe_o)
    else:
        est = _tiled_bytes(ptm, pth, C, H, bpe_c, bpe_o)
    budget = _vmem_budget()
    vmem_limit = int(min(max(est + _HEADROOM, 32 << 20), max(budget, 32 << 20)))

    # Activations: flatten rows, cast for the MXU, pad rows to the tile size.
    x2 = x.reshape(M, C).astype(compute_dtype)
    if Mp != M:
        x2 = jnp.pad(x2, ((0, Mp - M), (0, 0)))

    if plan_mode == "resident":
        grid = (Mp // ptm,)
        out = pl.pallas_call(
            _mlp_kernel_resident,
            out_shape=jax.ShapeDtypeStruct((Mp, C), out_dtype),
            grid_spec=pltpu.PrefetchScalarGridSpec(
                num_scalar_prefetch=0,
                grid=grid,
                in_specs=[
                    pl.BlockSpec((ptm, C), lambda i: (i, 0)),          # x rows
                    pl.BlockSpec((C, H), lambda i: (0, 0),
                                 pipeline_mode=pl.Buffered(1)),        # W1 resident
                    pl.BlockSpec((1, H), lambda i: (0, 0)),            # b1
                    pl.BlockSpec((H, C), lambda i: (0, 0),
                                 pipeline_mode=pl.Buffered(1)),        # W2 resident
                    pl.BlockSpec((1, C), lambda i: (0, 0)),            # b2
                ],
                out_specs=pl.BlockSpec((ptm, C), lambda i: (i, 0)),
            ),
            compiler_params=pltpu.CompilerParams(
                dimension_semantics=("parallel",),
                vmem_limit_bytes=vmem_limit),
        )(x2, w1, b1, w2, b2)
    else:
        nk = H // pth
        grid = (Mp // ptm, nk)

        if nk > 1:
            # Serpentine over k: row tile i+1 starts on the slab row tile i
            # ended on (saves one slab fetch per row-tile transition).
            def _kk(i, k):
                return k + (i % 2) * (nk - 1 - 2 * k)
        else:
            def _kk(i, k):
                return k

        out = pl.pallas_call(
            _mlp_kernel_tiled,
            out_shape=jax.ShapeDtypeStruct((Mp, C), out_dtype),
            grid_spec=pltpu.PrefetchScalarGridSpec(
                num_scalar_prefetch=0,
                grid=grid,
                in_specs=[
                    pl.BlockSpec((ptm, C), lambda i, k: (i, 0)),           # x rows
                    pl.BlockSpec((C, pth), lambda i, k: (0, _kk(i, k))),   # W1 slab
                    pl.BlockSpec((1, pth), lambda i, k: (0, _kk(i, k))),   # b1 slab
                    pl.BlockSpec((pth, C), lambda i, k: (_kk(i, k), 0)),   # W2 slab
                    pl.BlockSpec((1, C), lambda i, k: (0, 0)),             # b2
                ],
                out_specs=pl.BlockSpec((ptm, C), lambda i, k: (i, 0)),
                scratch_shapes=[pltpu.VMEM((ptm, C), jnp.float32)],
            ),
            compiler_params=pltpu.CompilerParams(
                dimension_semantics=("parallel", "arbitrary"),
                vmem_limit_bytes=vmem_limit),
        )(x2, w1, b1, w2, b2)

    if Mp != M:
        out = out[:M]
    return out.reshape(B, T, C)


# --------------------------------------------------------------------------
# Self-test
# --------------------------------------------------------------------------
if __name__ == "__main__":
    key = jax.random.PRNGKey(0)

    def make_params(k, C):
        H = 4 * C
        k1, k2, k3, k4 = jax.random.split(k, 4)
        w_fc = jax.random.normal(k1, (H, C), dtype=jnp.float32) * 0.02
        b_fc = jax.random.normal(k2, (H,), dtype=jnp.float32) * 0.02
        w_proj = jax.random.normal(k3, (C, H), dtype=jnp.float32) * (0.02 / math.sqrt(2))
        b_proj = jax.random.normal(k4, (C,), dtype=jnp.float32) * 0.02
        return w_fc, b_fc, w_proj, b_proj

    def ref_mlp(x, w_fc, b_fc, w_proj, b_proj):
        h = _gelu_tanh(jnp.einsum("btc,hc->bth", x, w_fc) + b_fc)
        return jnp.einsum("bth,ch->btc", h, w_proj) + b_proj

    # --- test 1: small shape, auto plan (resident-weight path) --------------
    B, T, C = 2, 8, 32                         # hidden = 4*32 = 128
    kx, kp, krest = jax.random.split(key, 3)
    x = jax.random.normal(kx, (B, T, C), dtype=jnp.float32)
    w_fc, b_fc, w_proj, b_proj = make_params(kp, C)
    params = prepare_mlp_params(w_fc, b_fc, w_proj, b_proj)   # once, at "init"
    y = jax.block_until_ready(mlp_forward(x, *params))
    y_ref = ref_mlp(x, w_fc, b_fc, w_proj, b_proj)
    assert y.shape == (B, T, C) and y.dtype == x.dtype
    assert jnp.allclose(y, y_ref, atol=5e-3, rtol=5e-2), "mismatch (resident path)"

    # --- test 2: force hidden-dim-tiled path (+ serpentine k map) -----------
    B2, T2, C2 = 2, 16, 64                     # hidden = 256 -> two 128 slabs
    kx2, kp2 = jax.random.split(krest)
    x2 = jax.random.normal(kx2, (B2, T2, C2), dtype=jnp.float32)
    w_fc2, b_fc2, w_proj2, b_proj2 = make_params(kp2, C2)
    params2 = prepare_mlp_params(w_fc2, b_fc2, w_proj2, b_proj2)
    y2 = jax.block_until_ready(
        mlp_forward(x2, *params2, tm=16, th=128, mode="tiled"))
    y2_ref = ref_mlp(x2, w_fc2, b_fc2, w_proj2, b_proj2)
    assert jnp.allclose(y2, y2_ref, atol=5e-3, rtol=5e-2), "mismatch (tiled path)"

    print("KERNEL_OK")
</pallas_src>

<mosaic_0001>
module attributes {stable_mosaic.version = 11 : i64} {
  func.func @_mlp_kernel_resident(%arg0: i32, %arg1: memref<16x32xbf16, #tpu.memory_space<vmem>>, %arg2: memref<32x128xbf16, #tpu.memory_space<vmem>>, %arg3: memref<1x128xf32, #tpu.memory_space<vmem>>, %arg4: memref<128x32xbf16, #tpu.memory_space<vmem>>, %arg5: memref<1x32xf32, #tpu.memory_space<vmem>>, %arg6: memref<16x32xf32, #tpu.memory_space<vmem>>) attributes {dimension_semantics = [#tpu.dimension_semantics<parallel>], iteration_bounds = array<i64: 1>, scalar_prefetch = 0 : i64, scratch_operands = 0 : i64, tpu.core_type = #tpu.core_type<tc>, window_params = [{transform_indices = @transform_0, window_bounds = array<i64: 16, 32>}, {pipeline_mode = #tpu.pipeline_mode<synchronous>, transform_indices = @transform_1, window_bounds = array<i64: 32, 128>}, {pipeline_mode = #tpu.pipeline_mode<synchronous>, transform_indices = @transform_2, window_bounds = array<i64: 1, 128>}, {pipeline_mode = #tpu.pipeline_mode<synchronous>, transform_indices = @transform_3, window_bounds = array<i64: 128, 32>}, {pipeline_mode = #tpu.pipeline_mode<synchronous>, transform_indices = @transform_4, window_bounds = array<i64: 1, 32>}, {transform_indices = @transform_5, window_bounds = array<i64: 16, 32>}]} {
    %c0 = arith.constant 0 : index
    %c0_0 = arith.constant 0 : index
    %0 = vector.load %arg1[%c0, %c0_0] : memref<16x32xbf16, #tpu.memory_space<vmem>>, vector<16x32xbf16>
    %c0_1 = arith.constant 0 : index
    %c0_2 = arith.constant 0 : index
    %1 = vector.load %arg2[%c0_1, %c0_2] : memref<32x128xbf16, #tpu.memory_space<vmem>>, vector<32x128xbf16>
    %cst = arith.constant dense<0.000000e+00> : vector<16x128xf32>
    %2 = tpu.matmul %0, %1, %cst {dimension_numbers = #tpu.dot_dimension_numbers<[1], [0], [0], [1], [0, 0, 1, 1], [], []>} : vector<16x32xbf16>, vector<32x128xbf16>, vector<16x128xf32> -> vector<16x128xf32>
    %c0_3 = arith.constant 0 : index
    %c0_4 = arith.constant 0 : index
    %3 = vector.load %arg3[%c0_3, %c0_4] : memref<1x128xf32, #tpu.memory_space<vmem>>, vector<1x128xf32>
    %4 = vector.broadcast %3 : vector<1x128xf32> to vector<16x128xf32>
    %5 = arith.addf %2, %4 : vector<16x128xf32>
    %cst_5 = arith.constant 5.000000e-01 : f32
    %6 = vector.broadcast %cst_5 : f32 to vector<16x128xf32>
    %7 = arith.mulf %6, %5 : vector<16x128xf32>
    %cst_6 = arith.constant 4.471500e-02 : f32
    %8 = vector.broadcast %cst_6 : f32 to vector<16x128xf32>
    %9 = arith.mulf %8, %5 : vector<16x128xf32>
    %10 = arith.mulf %9, %5 : vector<16x128xf32>
    %11 = arith.mulf %10, %5 : vector<16x128xf32>
    %12 = arith.addf %5, %11 : vector<16x128xf32>
    %cst_7 = arith.constant 0.797884583 : f32
    %13 = vector.broadcast %cst_7 : f32 to vector<16x128xf32>
    %14 = arith.mulf %13, %12 : vector<16x128xf32>
    %15 = math.tanh %14 : vector<16x128xf32>
    %cst_8 = arith.constant 1.000000e+00 : f32
    %16 = vector.broadcast %cst_8 : f32 to vector<16x128xf32>
    %17 = arith.addf %16, %15 : vector<16x128xf32>
    %18 = arith.mulf %7, %17 : vector<16x128xf32>
    %19 = arith.truncf %18 : vector<16x128xf32> to vector<16x128xbf16>
    %c0_9 = arith.constant 0 : index
    %c0_10 = arith.constant 0 : index
    %20 = vector.load %arg4[%c0_9, %c0_10] : memref<128x32xbf16, #tpu.memory_space<vmem>>, vector<128x32xbf16>
    %cst_11 = arith.constant dense<0.000000e+00> : vector<16x32xf32>
    %21 = tpu.matmul %19, %20, %cst_11 {dimension_numbers = #tpu.dot_dimension_numbers<[1], [0], [0], [1], [0, 0, 1, 1], [], []>} : vector<16x128xbf16>, vector<128x32xbf16>, vector<16x32xf32> -> vector<16x32xf32>
    %c0_12 = arith.constant 0 : index
    %c0_13 = arith.constant 0 : index
    %22 = vector.load %arg5[%c0_12, %c0_13] : memref<1x32xf32, #tpu.memory_space<vmem>>, vector<1x32xf32>
    %23 = vector.broadcast %22 : vector<1x32xf32> to vector<16x32xf32>
    %24 = arith.addf %21, %23 : vector<16x32xf32>
    %c0_14 = arith.constant 0 : index
    %c0_15 = arith.constant 0 : index
    %25 = vector.load %arg6[%c0_14, %c0_15] : memref<16x32xf32, #tpu.memory_space<vmem>>, vector<16x32xf32>
    tpu.vector_store %arg6[%c0_14, %c0_15], %24 {strides = array<i32>} : memref<16x32xf32, #tpu.memory_space<vmem>>, vector<16x32xf32>,
    return
  }
  func.func @transform_0(%arg0: i32) -> (i32, i32) {
    %c0_i32 = arith.constant 0 : i32
    %c0_i32_0 = arith.constant 0 : i32
    return %arg0, %c0_i32 : i32, i32
  }
  func.func @transform_1(%arg0: i32) -> (i32, i32) {
    %c0_i32 = arith.constant 0 : i32
    %c0_i32_0 = arith.constant 0 : i32
    %c0_i32_1 = arith.constant 0 : i32
    return %c0_i32, %c0_i32_0 : i32, i32
  }
  func.func @transform_2(%arg0: i32) -> (i32, i32) {
    %c0_i32 = arith.constant 0 : i32
    %c0_i32_0 = arith.constant 0 : i32
    %c0_i32_1 = arith.constant 0 : i32
    return %c0_i32, %c0_i32_0 : i32, i32
  }
  func.func @transform_3(%arg0: i32) -> (i32, i32) {
    %c0_i32 = arith.constant 0 : i32
    %c0_i32_0 = arith.constant 0 : i32
    %c0_i32_1 = arith.constant 0 : i32
    return %c0_i32, %c0_i32_0 : i32, i32
  }
  func.func @transform_4(%arg0: i32) -> (i32, i32) {
    %c0_i32 = arith.constant 0 : i32
    %c0_i32_0 = arith.constant 0 : i32
    %c0_i32_1 = arith.constant 0 : i32
    return %c0_i32, %c0_i32_0 : i32, i32
  }
  func.func @transform_5(%arg0: i32) -> (i32, i32) {
    %c0_i32 = arith.constant 0 : i32
    %c0_i32_0 = arith.constant 0 : i32
    return %arg0, %c0_i32 : i32, i32
  }
}

</mosaic_0001>

<bundles_post_ra>
// kernel: tpu_custom_call.1
= control target key start
LH: loop header
LB: loop body
LE: loop exit
PB: predicated region body
PF: predicated region fallthrough
CT: control target
= control target key end

     0   :  { %v342_v1 = vmov 0.0   ;;  %vm343_vm0 = vmmov 0   ;;  %vm52_vm1 = vcmask 261120   ;;  %s422_s0 = inlined_call_operand.vmem [shape: bf16[16,32], index: 0, kind: input, shape index: {}]   ;;  %s423_s1 = inlined_call_operand.vmem [shape: bf16[32,128], index: 1, kind: input, shape index: {}]   ;;  %s424_s2 = inlined_call_operand.vmem [shape: f32[1,128], index: 2, kind: input, shape index: {}]   ;;  %s425_s3 = inlined_call_operand.vmem [shape: bf16[128,32], index: 3, kind: input, shape index: {}]   ;;  %s426_s4 = inlined_call_operand.vmem [shape: f32[1,32], index: 4, kind: input, shape index: {}]   ;;  %s427_s5 = inlined_call_operand.hbm [shape: f32[16,32], index: 5, kind: output, shape index: {}]  }
   0x1   :  { %v305_v0 = vld [vmem:[%s423_s1 + $0x8] sm:$0xff]   ;;  %272 = vmatprep.subr.bf16.mxu0 %v342_v1  ;;  %280 = vmatprep.subr.bf16.mxu1 %v342_v1  ;;  %v306_v2 = vld [vmem:[%s423_s1] sm:$0xff]  }
   0x2   :  { %273 = vmatpush3.bf16.msra.mxu0 %v305_v0  ;;  %276 = vmatprep.mubr.msk.bf16.mxu0 %vm343_vm0, %v342_v1  ;;  %v307_v3 = vld [vmem:[%s422_s0] sm:$0xff]  }
   0x3   :  { %274 = vmatprep.subr.bf16.mxu0 %v342_v1  ;;  %296 = vmatprep.mubr.msk.bf16.mxu1 %vm343_vm0, %v342_v1 }
   0x6   :  { %275 = vmatpush3.bf16.msra.mxu0 %v306_v2 }
   0x7   :  { %10 = vsyncpa [#allocation3], 0  ;;  %v308_v4 = vld [vmem:[%s425_s3 + $0x38] sm:$0xff]   ;;  %v309_v5 = vld [vmem:[%s425_s3 + $0x30] sm:$0xff]   ;;  %s344_s15 = smov [#allocation2]  }
   0x8   :  { %281 = vmatpush3.bf16.msra.mxu1 %v308_v4  ;;  %v310_v6 = vld [vmem:[%s425_s3 + $0x28] sm:$0xff]   ;;  %v311_v7 = vld [vmem:[%s425_s3 + $0x20] sm:$0xff]   ;;  %v312_v8 = vld [vmem:[%s425_s3 + $0x18] sm:$0xff]   ;;  %s235_s16 = sshll.u32 %s344_s15, 4  ;;  %s236_s16 = int_to_ptr.vmem [resolvable:$true] %s235_s16 }
   0x9   :  { %277 = vmatmul.mubr.msk.bf16.vlgmr.msra.gmra.mxu0 %vm52_vm1, %v307_v3  ;;  %282 = vmatprep.subr.bf16.mxu1 %v342_v1  ;;  %v313_v9 = vld [vmem:[%s425_s3 + $0x10] sm:$0xff]   ;;  %v314_v10 = vld [vmem:[%s425_s3 + $0x8] sm:$0xff]   ;;  %v315_v11 = vld [vmem:[%s425_s3] sm:$0xff]   ;;  %s320_s17 = scalar_lea.vmem %s236_s16, 256  ;;  %p325_p1 = scmp.lt.s32.totalorder %s236_s16, %s236_s16 }
   0xa   :  { %v246_v12 = vld [vmem:[%s424_s2] ss:$0 sm:$0xff]  ;;  %p321_p0 = scmp.ne.s32.totalorder %s236_s16, %s320_s17  ;;  %p326_p2 = scmp.lt.s32.totalorder %s320_s17, %s320_s17 }
   0xb   :  { %v251_v38 = vld [vmem:[%s426_s4] ss:$0 sm:$0xff] }
   0xc   :  { %283 = vmatpush3.bf16.msra.mxu1 %v309_v5  ;;  %p327_p3 = por %p326_p2, %p325_p1 }
   0xd   :  { %284 = vmatprep.subr.bf16.mxu1 %v342_v1 }
   0xe   :  { %p328_p4 = pnand %p327_p3, %p321_p0 }
  0x10   :  { %285 = vmatpush3.bf16.msra.mxu1 %v310_v6 }
  0x11   :  { %286 = vmatprep.subr.bf16.mxu1 %v342_v1 }
  0x14   :  { %287 = vmatpush3.bf16.msra.mxu1 %v311_v7 }
  0x15   :  { %288 = vmatprep.subr.bf16.mxu1 %v342_v1 }
  0x18   :  { %289 = vmatpush3.bf16.msra.mxu1 %v312_v8 }
  0x19   :  { %290 = vmatprep.subr.bf16.mxu1 %v342_v1 }
  0x1c   :  { %291 = vmatpush3.bf16.msra.mxu1 %v313_v9 }
  0x1d   :  { %292 = vmatprep.subr.bf16.mxu1 %v342_v1 }
  0x20   :  { %293 = vmatpush3.bf16.msra.mxu1 %v314_v10 }
  0x21   :  { %294 = vmatprep.subr.bf16.mxu1 %v342_v1 }
  0x24   :  { %295 = vmatpush3.bf16.msra.mxu1 %v315_v11 }
  0xc9   :  { %v90_v13 = vpop.f32.mrf.mxu0 }
  0xca   :  { %v91_v14 = vadd.f32 %v246_v12, %v90_v13 }
  0xcb   :  { %v278_v15 = vpop.f32.mrf.mxu0 }
  0xcc   :  { %v99_v16 = vmul.f32 0.044715, %v91_v14  ;;  %v97_v32 = vmul.f32 0.5, %v91_v14 }
  0xcd   :  { %v93_v17 = vpop.f32.mrf.mxu0 }
  0xce   :  { %v101_v18 = vmul.f32 %v99_v16, %v91_v14  ;;  %v94_v19 = vadd.f32 %v246_v12, %v93_v17 }
  0xcf   :  { %v279_v20 = vpop.f32.mrf.mxu0 }
  0xd0   :  { %v103_v21 = vmul.f32 %v101_v18, %v91_v14  ;;  %v100_v22 = vmul.f32 0.044715, %v94_v19  ;;  %v98_v33 = vmul.f32 0.5, %v94_v19 }
  0xd2   :  { %v102_v23 = vmul.f32 %v100_v22, %v94_v19  ;;  %v105_v24 = vadd.f32 %v103_v21, %v91_v14 }
  0xd4   :  { %v104_v25 = vmul.f32 %v102_v23, %v94_v19  ;;  %v107_v26 = vmul.f32 0.7978846, %v105_v24 }
  0xd6   :  { %v106_v27 = vadd.f32 %v104_v25, %v94_v19  ;;  %316 = vtanh.f32 %v107_v26 }
  0xd8   :  { %v108_v28 = vmul.f32 0.7978846, %v106_v27 }
  0xda   :  { %318 = vtanh.f32 %v108_v28 }
  0xe3   :  { %v317_v29 = vpop.eup %316 }
  0xe4   :  { %v111_v30 = vadd.f32 1.0, %v317_v29 }
  0xe6   :  { %v113_v35 = vmul.f32 %v111_v30, %v97_v32 }
  0xe7   :  { %v319_v31 = vpop.eup %318 }
  0xe8   :  { %v112_v34 = vadd.f32 1.0, %v319_v31 }
  0xea   :  { %v114_v36 = vmul.f32 %v112_v34, %v98_v33 }
  0xec   :  { %v115_v37 = vpack.c.bf16 %v114_v36, %v113_v35 }
  0xee   :  { %297 = vmatmul.mubr.bf16.vlgmr.msra.gmra.mxu1 %v115_v37 }
 0x1ae   :  { %v221_v39 = vpop.f32.mrf.mxu1 }
 0x1af   :  { %v222_v40 = vadd.f32 %v251_v38, %v221_v39 }
 0x1b0   :  { %v298_v41 = vpop.f32.mrf.mxu1 }
 0x1b1   :  { %228 = vst.msk [vmem:[#allocation2] sm:$0xff] %vm52_vm1, %v222_v40 }
 0x1b2   :  { %v224_v42 = vpop.f32.mrf.mxu1 }
 0x1b3   :  { %v225_v43 = vadd.f32 %v251_v38, %v224_v42 }
 0x1b4   :  { %v299_v44 = vpop.f32.mrf.mxu1 }
 0x1b5   :  { %229 = vst.msk [vmem:[#allocation2 + $0x8] sm:$0xff] %vm52_vm1, %v225_v43 }
 0x1b6   :  { %331 = shalt.err (!%p328_p4)
}
 0x1b7   :  { %s345_s4 = smov 128   ;;  %s346_s18 = smov 8  }
 0x1b8   :  { %241 = dma.vmem_to_hbm [thread:$0]  %s236_s16, 256, %s427_s5, [#allocation3], %s345_s4, %s345_s4, %s346_s18  }
 0x1b9   :  { %340 = dma.done.wait [#allocation3], 256  }
 0x1ba   :  { %341 = vsyncadd [#allocation3], 4294967040 }
 0x1bb   :  { %245 = vsyncpa [#allocation3], 1 }

</bundles_post_ra>
